<compile_context>
chip_gen: v7x
topology: tpu7x:2x2x1
jax: 0.10.0
libtpu: 0.0.40
codegen_flags: <defaults>
</compile_context>

<pallas_src>
import jax
import jax.numpy as jnp
from jax.experimental import pallas as pl
from jax.experimental.pallas import tpu as pltpu

# ---- module hyper-parameters (synthetic, deterministic) ----------------------
COVERT = {"n_channel": 4, "m": 4}
CHANNEL = {"channel_type": "awgn"}

N_CH = COVERT["n_channel"]
M = COVERT["m"]

D_X = N_CH * 2                 # 8   (raw signal features)
D_IN = D_X + M                 # 12  (signal + one-hot message)
D_H1 = N_CH * 4 + M * 2        # 24
D_H2 = N_CH * 4 + M * 2        # 24
D_H3 = N_CH * M                # 16
D_OUT = N_CH * 2               # 8

# Packed parameter slab layout: per layer, rows [r : r+d_out) hold
# W (cols [0:d_in)) and b (col d_in). Row offsets are 8-aligned.
L_ROWS = (0, 24, 48, 64)       # layer 1..4 row offsets
SLAB_ROWS = 72                 # 24 + 24 + 16 + 8
SLAB_COLS = 128                # one lane tile


# ---- Pallas kernel: fused one-hot + 4-layer MLP -------------------------------
def alice_mlp_kernel(x_ref, m_ref, p_ref, out_ref):
    tb = x_ref.shape[0]

    # x arrives batch-major (tb, 8); transpose to feature-major (8, tb) in-kernel
    # (XLU work, free relative to DMA) so all intermediates are lane-dense.
    x_t = x_ref[...].T                                  # (D_X, tb) f32
    m_row = m_ref[...]                                  # (1, tb)  i32

    # Fused one_hot(m, M) along the sublane axis and sublane-concat with x.T
    # -> a single (D_H1, D_IN) x (D_IN, tb) layer-1 contraction.
    cls = jax.lax.broadcasted_iota(jnp.int32, (M, tb), 0)
    one_hot = (cls == m_row).astype(jnp.float32)        # (M, tb)
    a = jnp.concatenate([x_t, one_hot], axis=0)         # (D_IN, tb)

    # Static slices of the packed parameter slab (zero-cost ref views).
    r1, r2, r3, r4 = L_ROWS
    w1 = p_ref[r1:r1 + D_H1, 0:D_IN]
    b1 = p_ref[r1:r1 + D_H1, D_IN:D_IN + 1]
    w2 = p_ref[r2:r2 + D_H2, 0:D_H1]
    b2 = p_ref[r2:r2 + D_H2, D_H1:D_H1 + 1]
    w3 = p_ref[r3:r3 + D_H3, 0:D_H2]
    b3 = p_ref[r3:r3 + D_H3, D_H2:D_H2 + 1]
    w4 = p_ref[r4:r4 + D_OUT, 0:D_H3]
    b4 = p_ref[r4:r4 + D_OUT, D_H3:D_H3 + 1]

    h = jnp.maximum(jnp.dot(w1, a, preferred_element_type=jnp.float32) + b1, 0.0)
    h = jnp.maximum(jnp.dot(w2, h, preferred_element_type=jnp.float32) + b2, 0.0)
    h = jnp.maximum(jnp.dot(w3, h, preferred_element_type=jnp.float32) + b3, 0.0)
    h = jnp.dot(w4, h, preferred_element_type=jnp.float32) + b4      # (D_OUT, tb)

    # Store batch-major (tb, D_OUT): removes the wrapper-side output transpose
    # (a whole extra HBM pass on a memory-bound op).
    out_ref[...] = jnp.tanh(h).T.astype(out_ref.dtype)


def _round_up(a, b):
    return pl.cdiv(a, b) * b


def pack_params(params):
    """Pack (W, b) of all 4 layers into one (72, 128) f32 slab."""
    slab = jnp.zeros((SLAB_ROWS, SLAB_COLS), jnp.float32)
    for (w, b), r in zip(params, L_ROWS):
        d_out, d_in = w.shape
        slab = slab.at[r:r + d_out, 0:d_in].set(w.astype(jnp.float32))
        slab = slab.at[r:r + d_out, d_in].set(b.astype(jnp.float32))
    return slab


# ---- pure-JAX reference / small-batch fallback --------------------------------
def alice_forward_ref(x, m, params):
    (w1, b1), (w2, b2), (w3, b3), (w4, b4) = params      # weights stored (out, in)
    hp = jax.lax.Precision.HIGHEST
    mh = jax.nn.one_hot(m, M, dtype=x.dtype)
    a = jnp.concatenate([x, mh], axis=1)
    a = jax.nn.relu(jnp.dot(a, w1.T, precision=hp) + b1)
    a = jax.nn.relu(jnp.dot(a, w2.T, precision=hp) + b2)
    a = jax.nn.relu(jnp.dot(a, w3.T, precision=hp) + b3)
    return jnp.tanh(jnp.dot(a, w4.T, precision=hp) + b4)


# ---- public forward ------------------------------------------------------------
def alice_forward(x, m, params, h=None, *, tb_max=1024, target_steps=8,
                  min_pallas_batch=1024):
    """x: (B, 2*n_channel) f32, m: (B,) int message indices, h: None (AWGN branch)."""
    assert h is None, "AWGN branch only (h is None)"
    # TODO(synk): Rayleigh branch (h is not None, extra fading inputs) not implemented.

    B = x.shape[0]
    x = x.astype(jnp.float32)
    if B < min_pallas_batch:
        # Small batch: fused XLA path wins over Pallas launch/per-step overhead.
        return alice_forward_ref(x, m, params)

    slab = pack_params(params)

    # Grid-step / padding control: aim for >= target_steps grid steps, tiles
    # capped at tb_max and 128-aligned, so padding waste stays ~< 1/target_steps.
    b_lane = _round_up(B, 128)
    n_steps = max(target_steps, pl.cdiv(b_lane, tb_max))
    tb = _round_up(pl.cdiv(b_lane, n_steps), 128)
    b_pad = _round_up(b_lane, tb)

    if b_pad != B:
        x_in = jnp.pad(x, ((0, b_pad - B), (0, 0)))
        m_in = jnp.pad(m.astype(jnp.int32), (0, b_pad - B))
    else:
        x_in = x
        m_in = m.astype(jnp.int32)
    m_row = m_in.reshape(1, b_pad)                        # lane-major message row

    grid = (b_pad // tb,)
    out = pl.pallas_call(
        alice_mlp_kernel,
        out_shape=jax.ShapeDtypeStruct((b_pad, D_OUT), jnp.float32),
        grid=grid,
        in_specs=[
            # batch-major x, no host transpose; advances along the batch axis
            pl.BlockSpec((tb, D_X), lambda i: (i, 0)),
            # message indices as a (1, tb) lane row
            pl.BlockSpec((1, tb), lambda i: (0, i)),
            # single packed parameter slab, VMEM-resident across all grid steps
            pl.BlockSpec((SLAB_ROWS, SLAB_COLS), lambda i: (0, 0)),
        ],
        out_specs=pl.BlockSpec((tb, D_OUT), lambda i: (i, 0)),
        compiler_params=pltpu.CompilerParams(
            dimension_semantics=("parallel",),
        ),
        # If x/m DMA is still exposed at small tb, add pipeline_mode=pl.Buffered(3)
        # on the x/m/out BlockSpecs (plenty of VMEM headroom).
    )(x_in, m_row, slab)

    return out[:B] if b_pad != B else out


# ---- deterministic parameter init (PyTorch nn.Linear-style uniform) -----------
def init_linear(key, fan_in, fan_out, dtype=jnp.float32):
    kw, kb = jax.random.split(key)
    bound = 1.0 / (fan_in ** 0.5)
    # stored as (out, in), matching nn.Linear
    w = jax.random.uniform(kw, (fan_out, fan_in), dtype, -bound, bound)
    b = jax.random.uniform(kb, (fan_out,), dtype, -bound, bound)
    return w, b


def init_params(key):
    k1, k2, k3, k4 = jax.random.split(key, 4)
    return (
        init_linear(k1, D_IN, D_H1),
        init_linear(k2, D_H1, D_H2),
        init_linear(k3, D_H2, D_H3),
        init_linear(k4, D_H3, D_OUT),
    )


if __name__ == "__main__":
    key = jax.random.PRNGKey(0)
    kp, kx, km = jax.random.split(key, 3)

    params = init_params(kp)

    # Main case: exercises the Pallas kernel (8 grid steps of tb=128).
    B = 1024
    x = jax.random.normal(kx, (B, D_X), dtype=jnp.float32)
    m = jax.random.randint(km, (B,), 0, M, dtype=jnp.int32)

    fwd = jax.jit(lambda xx, mm: alice_forward(xx, mm, params))
    out = jax.block_until_ready(fwd(x, m))
    ref = alice_forward_ref(x, m, params)
    assert out.shape == (B, D_OUT)
    assert jnp.allclose(out, ref, atol=1e-4, rtol=1e-4)

    # Unaligned batch through the Pallas path (exercises padding + slicing).
    out_odd = jax.block_until_ready(
        alice_forward(x[:1000], m[:1000], params, h=None, min_pallas_batch=128))
    assert out_odd.shape == (1000, D_OUT)
    assert jnp.allclose(out_odd, ref[:1000], atol=1e-4, rtol=1e-4)

    # Tiny batch: fused XLA fallback by design.
    out_small = jax.block_until_ready(alice_forward(x[:2], m[:2], params, h=None))
    assert out_small.shape == (2, D_OUT)
    assert jnp.allclose(out_small, ref[:2], atol=1e-4, rtol=1e-4)

    print("KERNEL_OK")
</pallas_src>

<mosaic_0001>
module attributes {stable_mosaic.version = 11 : i64} {
  func.func @alice_mlp_kernel(%arg0: i32, %arg1: memref<128x8xf32, #tpu.memory_space<vmem>>, %arg2: memref<1x128xi32, #tpu.memory_space<vmem>>, %arg3: memref<72x128xf32, #tpu.memory_space<vmem>>, %arg4: memref<128x8xf32, #tpu.memory_space<vmem>>) attributes {dimension_semantics = [#tpu.dimension_semantics<parallel>], iteration_bounds = array<i64: 8>, scalar_prefetch = 0 : i64, scratch_operands = 0 : i64, tpu.core_type = #tpu.core_type<tc>, window_params = [{transform_indices = @transform_0, window_bounds = array<i64: 128, 8>}, {transform_indices = @transform_1, window_bounds = array<i64: 1, 128>}, {pipeline_mode = #tpu.pipeline_mode<synchronous>, transform_indices = @transform_2, window_bounds = array<i64: 72, 128>}, {transform_indices = @transform_3, window_bounds = array<i64: 128, 8>}]} {
    %c0 = arith.constant 0 : index
    %c0_0 = arith.constant 0 : index
    %0 = vector.load %arg1[%c0, %c0_0] : memref<128x8xf32, #tpu.memory_space<vmem>>, vector<128x8xf32>
    %1 = tpu.transpose %0, [1, 0] : vector<128x8xf32> -> vector<8x128xf32>
    %c0_1 = arith.constant 0 : index
    %c0_2 = arith.constant 0 : index
    %2 = vector.load %arg2[%c0_1, %c0_2] : memref<1x128xi32, #tpu.memory_space<vmem>>, vector<1x128xi32>
    %3 = tpu.iota {dimensions = array<i32: 0>} : vector<4x128xi32>
    %4 = vector.broadcast %2 : vector<1x128xi32> to vector<4x128xi32>
    %5 = arith.cmpi eq, %3, %4 : vector<4x128xi32>
    %6 = arith.extui %5 : vector<4x128xi1> to vector<4x128xi32>
    %7 = arith.sitofp %6 : vector<4x128xi32> to vector<4x128xf32>
    %8 = tpu.concatenate %1, %7 in 0 : vector<8x128xf32>, vector<4x128xf32> -> vector<12x128xf32>
    %c0_3 = arith.constant 0 : index
    %c0_4 = arith.constant 0 : index
    %9 = vector.load %arg3[%c0_3, %c0_4] : memref<72x128xf32, #tpu.memory_space<vmem>>, vector<24x12xf32>
    %c0_5 = arith.constant 0 : index
    %c12 = arith.constant 12 : index
    %10 = vector.load %arg3[%c0_5, %c12] : memref<72x128xf32, #tpu.memory_space<vmem>>, vector<24x1xf32>
    %c24 = arith.constant 24 : index
    %c0_6 = arith.constant 0 : index
    %11 = vector.load %arg3[%c24, %c0_6] : memref<72x128xf32, #tpu.memory_space<vmem>>, vector<24x24xf32>
    %c24_7 = arith.constant 24 : index
    %c24_8 = arith.constant 24 : index
    %12 = vector.load %arg3[%c24_7, %c24_8] : memref<72x128xf32, #tpu.memory_space<vmem>>, vector<24x1xf32>
    %c48 = arith.constant 48 : index
    %c0_9 = arith.constant 0 : index
    %13 = vector.load %arg3[%c48, %c0_9] : memref<72x128xf32, #tpu.memory_space<vmem>>, vector<16x24xf32>
    %c48_10 = arith.constant 48 : index
    %c24_11 = arith.constant 24 : index
    %14 = vector.load %arg3[%c48_10, %c24_11] : memref<72x128xf32, #tpu.memory_space<vmem>>, vector<16x1xf32>
    %c64 = arith.constant 64 : index
    %c0_12 = arith.constant 0 : index
    %15 = vector.load %arg3[%c64, %c0_12] : memref<72x128xf32, #tpu.memory_space<vmem>>, vector<8x16xf32>
    %c64_13 = arith.constant 64 : index
    %c16 = arith.constant 16 : index
    %16 = vector.load %arg3[%c64_13, %c16] : memref<72x128xf32, #tpu.memory_space<vmem>>, vector<8x1xf32>
    %cst = arith.constant dense<0.000000e+00> : vector<24x128xf32>
    %17 = tpu.matmul %9, %8, %cst {dimension_numbers = #tpu.dot_dimension_numbers<[1], [0], [0], [1], [0, 0, 1, 1], [], []>} : vector<24x12xf32>, vector<12x128xf32>, vector<24x128xf32> -> vector<24x128xf32>
    %18 = vector.broadcast %10 : vector<24x1xf32> to vector<24x128xf32>
    %19 = arith.addf %17, %18 : vector<24x128xf32>
    %cst_14 = arith.constant 0.000000e+00 : f32
    %20 = vector.broadcast %cst_14 : f32 to vector<24x128xf32>
    %21 = arith.maximumf %19, %20 : vector<24x128xf32>
    %cst_15 = arith.constant dense<0.000000e+00> : vector<24x128xf32>
    %22 = tpu.matmul %11, %21, %cst_15 {dimension_numbers = #tpu.dot_dimension_numbers<[1], [0], [0], [1], [0, 0, 1, 1], [], []>} : vector<24x24xf32>, vector<24x128xf32>, vector<24x128xf32> -> vector<24x128xf32>
    %23 = vector.broadcast %12 : vector<24x1xf32> to vector<24x128xf32>
    %24 = arith.addf %22, %23 : vector<24x128xf32>
    %cst_16 = arith.constant 0.000000e+00 : f32
    %25 = vector.broadcast %cst_16 : f32 to vector<24x128xf32>
    %26 = arith.maximumf %24, %25 : vector<24x128xf32>
    %cst_17 = arith.constant dense<0.000000e+00> : vector<16x128xf32>
    %27 = tpu.matmul %13, %26, %cst_17 {dimension_numbers = #tpu.dot_dimension_numbers<[1], [0], [0], [1], [0, 0, 1, 1], [], []>} : vector<16x24xf32>, vector<24x128xf32>, vector<16x128xf32> -> vector<16x128xf32>
    %28 = vector.broadcast %14 : vector<16x1xf32> to vector<16x128xf32>
    %29 = arith.addf %27, %28 : vector<16x128xf32>
    %cst_18 = arith.constant 0.000000e+00 : f32
    %30 = vector.broadcast %cst_18 : f32 to vector<16x128xf32>
    %31 = arith.maximumf %29, %30 : vector<16x128xf32>
    %cst_19 = arith.constant dense<0.000000e+00> : vector<8x128xf32>
    %32 = tpu.matmul %15, %31, %cst_19 {dimension_numbers = #tpu.dot_dimension_numbers<[1], [0], [0], [1], [0, 0, 1, 1], [], []>} : vector<8x16xf32>, vector<16x128xf32>, vector<8x128xf32> -> vector<8x128xf32>
    %33 = vector.broadcast %16 : vector<8x1xf32> to vector<8x128xf32>
    %34 = arith.addf %32, %33 : vector<8x128xf32>
    %35 = math.tanh %34 : vector<8x128xf32>
    %36 = tpu.transpose %35, [1, 0] : vector<8x128xf32> -> vector<128x8xf32>
    %c0_20 = arith.constant 0 : index
    %c0_21 = arith.constant 0 : index
    %37 = vector.load %arg4[%c0_20, %c0_21] : memref<128x8xf32, #tpu.memory_space<vmem>>, vector<128x8xf32>
    tpu.vector_store %arg4[%c0_20, %c0_21], %36 {strides = array<i32>} : memref<128x8xf32, #tpu.memory_space<vmem>>, vector<128x8xf32>,
    return
  }
  func.func @transform_0(%arg0: i32) -> (i32, i32) {
    %c0_i32 = arith.constant 0 : i32
    %c0_i32_0 = arith.constant 0 : i32
    return %arg0, %c0_i32 : i32, i32
  }
  func.func @transform_1(%arg0: i32) -> (i32, i32) {
    %c0_i32 = arith.constant 0 : i32
    %c0_i32_0 = arith.constant 0 : i32
    return %c0_i32, %arg0 : i32, i32
  }
  func.func @transform_2(%arg0: i32) -> (i32, i32) {
    %c0_i32 = arith.constant 0 : i32
    %c0_i32_0 = arith.constant 0 : i32
    %c0_i32_1 = arith.constant 0 : i32
    return %c0_i32, %c0_i32_0 : i32, i32
  }
  func.func @transform_3(%arg0: i32) -> (i32, i32) {
    %c0_i32 = arith.constant 0 : i32
    %c0_i32_0 = arith.constant 0 : i32
    return %arg0, %c0_i32 : i32, i32
  }
}

</mosaic_0001>

<bundles_post_ra>
// kernel: _lambda_.1
= control target key start
LH: loop header
LB: loop body
LE: loop exit
PB: predicated region body
PF: predicated region fallthrough
CT: control target
= control target key end

     0   :  { %s909_s12 = smov 0   ;;  %s1044_s0 = inlined_call_operand.vmem [shape: f32[1024,8], index: 0, kind: input, shape index: {}]   ;;  %s1045_s1 = inlined_call_operand.vmem [shape: s32[1,1024], index: 1, kind: input, shape index: {}]   ;;  %s1046_s2 = inlined_call_operand.vmem [shape: f32[72,128], index: 2, kind: input, shape index: {}]   ;;  %s1047_s3 = inlined_call_operand.vmem [shape: f32[1024,8], index: 3, kind: output, shape index: {}]  }
   0x1 LB: > { %s915_s13 = sadd.s32 4294967295, %s880_s12   ;;  %p757_p0 = scmp.ge.s32.totalorder %s880_s12, 1  ;;  %s880_s12 = sphi %s909_s12, %s13_s12  }
   0x2   : > { %p146_p1 = scmp.lt.s32.totalorder %s880_s12, 9 }
   0x4   : > { %p147_p2 = pnand %p757_p0, %p146_p1 }
   0x5   : > { %s758_s14 = sshll.u32 (!%p147_p2), %s915_s13, 4  ;;  %v882_v2 = vmov (!%p147_p2), 0.0|0.0   ;;  %vm883_vm0 = vmmov (!%p147_p2), 0   ;;  %v884_v3 = vmov (!%p147_p2), 0.0   ;;  %v246_v7 = vld [vmem:[%s1046_s2] sm:$0xff] (!%p147_p2)  ;;  %v885_v8 = vmov (!%p147_p2), 12  }
   0x6   : > { %150 = sbr.rel (%p147_p2) target bundleno = 1243 (0x4db), region = 32  ;;  %p174_p3 = scmp.lt.s32.totalorder (!%p147_p2), %s758_s14, 127  ;;  %839 = vmatprep.subr.bf16.mxu0 (!%p147_p2), %v882_v2  ;;  %843 = vmatprep.subr.bf16.mxu1 (!%p147_p2), %v882_v2  ;;  %v247_v10 = vld [vmem:[%s1046_s2 + $0x8] sm:$0xff] (!%p147_p2)  ;;  %v248_v12 = vld [vmem:[%s1046_s2 + $0x10] sm:$0xff] (!%p147_p2)  ;;  %v237_v22 = vlaneseq (!%p147_p2)  ;;  %vm277_vm2 = vcmask (!%p147_p2), 1043456   ;;  %vm886_vm3 = vmmov (!%p147_p2), 1  }
   0x7   : > { %799 = vmatprep.mubr.msk.f32.mxu0 (!%p147_p2), %vm883_vm0, %v884_v3  ;;  %814 = vmatprep.mubr.msk.f32.mxu1 (!%p147_p2), %vm883_vm0, %v884_v3  ;;  %p179_p4 = scmp.lt.s32.totalorder (!%p147_p2), %s915_s13, 7  ;;  %vm841_vm4 = vmpackc.low (!%p147_p2), %vm277_vm2, %vm886_vm3  ;;  %vm270_vm5 = vcmask (!%p147_p2), 97280   ;;  %vm379_vm6 = vcmask (!%p147_p2), 195584   ;;  %v252_v28 = vld [vmem:[%s1046_s2 + $0x30] sm:$0xff] (!%p147_p2)  ;;  %v249_v29 = vld [vmem:[%s1046_s2 + $0x18] sm:$0xff] (!%p147_p2)  ;;  %v887_v30 = vmov (!%p147_p2), 24  }
   0x8   : > { %868 = vset.pattern.permute.xlu1 (!%p147_p2), %v885_v8  ;;  %v238_v23 = vshrl.u32 (!%p147_p2), %v237_v22, 7  ;;  %v250_v31 = vld [vmem:[%s1046_s2 + $0x20] sm:$0xff] (!%p147_p2)  ;;  %v251_v32 = vld [vmem:[%s1046_s2 + $0x28] sm:$0xff] (!%p147_p2)  ;;  %v253_v33 = vld [vmem:[%s1046_s2 + $0x38] sm:$0xff] (!%p147_p2)  ;;  %vm565_vm7 = vcmask (!%p147_p2), 130048   ;;  %vm671_vm8 = vcmask (!%p147_p2), 64512  }
   0x9   : > { %257 = vperm.xlu1 (!%p147_p2), %868, %v246_v7  }
   0xd   : > { %s1049_s14 = smov (!%p174_p3, %s758_s14), 127  ;;  %262 = vperm.xlu1 %868, %v247_v10   ;;  %s1051_s13 = smov (!%p179_p4, %s915_s13), 7 }
   0xe   : > { %s759_s15 = sshll.u32 %s1049_s14, 3  ;;  %s181_s27 = scalar_lea.vmem %s1045_s1, %s1051_s13 }
   0xf   : > { %s928_s18 = scalar_lea.vmem %s1044_s0, %s759_s15  ;;  %v762_v24 = vld [vmem:[%s181_s27] ss:$0 sm:$0xff] }
  0x10   : > { %v188_v0 = vld [vmem:[%s928_s18] sm:$0xff]  ;;  %v189_v1 = vld [vmem:[%s928_s18 + $0x8] sm:$0xff]  ;;  %v190_v4 = vld [vmem:[%s928_s18 + $0x10] sm:$0xff]  ;;  %vm243_vm1 = vcmp.eq.s32.totalorder %v238_v23, %v762_v24 }
  0x11   : > { %204 = vxpose.xlu0.b32.start [1/16] (narrow) %v188_v0, 8  ;;  %v191_v5 = vld [vmem:[%s928_s18 + $0x18] sm:$0xff]  ;;  %v192_v6 = vld [vmem:[%s928_s18 + $0x20] sm:$0xff]  ;;  %v193_v9 = vld [vmem:[%s928_s18 + $0x28] sm:$0xff]  ;;  %267 = vperm.xlu1 %868, %v248_v12   ;;  %v763_v25 = vsel %vm243_vm1, 1.0, %v884_v3 }
  0x12   : > { %v194_v11 = vld [vmem:[%s928_s18 + $0x30] sm:$0xff]  ;;  %v195_v13 = vld [vmem:[%s928_s18 + $0x38] sm:$0xff]  ;;  %v196_v14 = vld [vmem:[%s928_s18 + $0x40] sm:$0xff] }
  0x13   : > { %v197_v15 = vld [vmem:[%s928_s18 + $0x48] sm:$0xff]  ;;  %v198_v16 = vld [vmem:[%s928_s18 + $0x50] sm:$0xff]  ;;  %v199_v17 = vld [vmem:[%s928_s18 + $0x58] sm:$0xff] }
  0x14   : > { %v200_v18 = vld [vmem:[%s928_s18 + $0x60] sm:$0xff]  ;;  %v201_v19 = vld [vmem:[%s928_s18 + $0x68] sm:$0xff]  ;;  %v202_v20 = vld [vmem:[%s928_s18 + $0x70] sm:$0xff] }
  0x15   : > { %205 = vxpose.xlu0.b32.cont [2/16] (narrow) %v189_v1, 8  ;;  %v203_v21 = vld [vmem:[%s928_s18 + $0x78] sm:$0xff]  ;;  %869 = vset.pattern.permute.xlu1 %v887_v30  ;;  %s1007_s18 = scalar_lea.vmem %s1047_s3, %s759_s15 }
  0x16   : > { %366 = vperm.xlu1 %869, %v249_v29  }
  0x19   : > { %206 = vxpose.xlu0.b32.cont [3/16] (narrow) %v190_v4, 8 }
  0x1a   : > { %371 = vperm.xlu1 %869, %v250_v31  }
  0x1d   : > { %207 = vxpose.xlu0.b32.cont [4/16] (narrow) %v191_v5, 8 }
  0x1e   : > { %376 = vperm.xlu1 %869, %v251_v32  }
  0x21   : > { %208 = vxpose.xlu0.b32.cont [5/16] (narrow) %v192_v6, 8 }
  0x22   : > { %471 = vperm.xlu1 %869, %v252_v28  }
  0x25   : > { %209 = vxpose.xlu0.b32.cont [6/16] (narrow) %v193_v9, 8 }
  0x26   : > { %476 = vperm.xlu1 %869, %v253_v33  }
  0x29   : > { %210 = vxpose.xlu0.b32.cont [7/16] (narrow) %v194_v11, 8 }
  0x2d   : > { %211 = vxpose.xlu0.b32.cont [8/16] (narrow) %v195_v13, 8 }
  0x31   : > { %212 = vxpose.xlu0.b32.cont [9/16] (narrow) %v196_v14, 8 }
  0x35   : > { %213 = vxpose.xlu0.b32.cont [10/16] (narrow) %v197_v15, 8 }
  0x39   : > { %214 = vxpose.xlu0.b32.cont [11/16] (narrow) %v198_v16, 8 }
  0x3d   : > { %215 = vxpose.xlu0.b32.cont [12/16] (narrow) %v199_v17, 8 }
  0x41   : > { %216 = vxpose.xlu0.b32.cont [13/16] (narrow) %v200_v18, 8 }
  0x45   : > { %217 = vxpose.xlu0.b32.cont [14/16] (narrow) %v201_v19, 8 }
  0x49   : > { %218 = vxpose.xlu0.b32.cont [15/16] (narrow) %v202_v20, 8 }
  0x4d   : > { %219 = vxpose.xlu0.b32.end [16/16] (narrow) %v203_v21, 8 }
  0x88   : > { %v258_v34 = vpop.permute.xlu1 %257 }
  0x8c   : > { %v263_v37 = vpop.permute.xlu1 %262 }
  0x90   : > { %v268_v44 = vpop.permute.xlu1 %267 }
  0x91   : > { %v220_v26 = vpop.trf.xlu0 }
  0x92   : > { %v840_v27 = vpack.c.bf16 %v763_v25, %v220_v26 }
  0x94   : > { %842 = vmatpush3.bf16.msk.msra.mxu0 %vm841_vm4, %v840_v27 }
  0x95   : > { %v367_v50 = vpop.permute.xlu1 %366 }
  0x97   : > { %800 = vmatmul.mubr.msk.f32.vlgmr.msra.gmra.mrb[0].mxu0 %vm270_vm5, %v246_v7 }
  0x98   : > { %802 = vmatprep.mubr.msk.f32.mxu0 %vm883_vm0, %v884_v3 }
  0x99   : > { %v372_v53 = vpop.permute.xlu1 %371 }
  0x9b   : > { %803 = vmatmul.mubr.msk.f32.gmra.mrb[2].mxu0 %vm270_vm5, %v247_v10 }
  0x9c   : > { %805 = vmatprep.mubr.msk.f32.mxu0 %vm883_vm0, %v884_v3 }
  0x9d   : > { %v377_v60 = vpop.permute.xlu1 %376 }
  0x9f   : > { %806 = vmatmul.mubr.msk.f32.gmra.mrb[4].mxu0 %vm270_vm5, %v248_v12 }
  0xa0   : > { %829 = vmatprep.mubr.msk.f32.mxu0 %vm379_vm6, %v252_v28 }
  0xa1   : > { %v472_v4 = vpop.permute.xlu1 %471 }
  0xa5   : > { %v477_v5 = vpop.permute.xlu1 %476 }
 0x16a   : > { %v347_v35 = vpop.f32.mrb[0].mxu0 }
 0x16b   : > { %v801_v36 = vpop.f32.mrb[1].mxu0  ;;  %v348_v38 = vadd.f32 %v347_v35, %v258_v34 }
 0x16d   : > { %v361_v42 = vmax.f32 %v348_v38, 0.0 }
 0x16e   : > { %v352_v39 = vpop.f32.mrb[2].mxu0 }
 0x16f   : > { %v353_v40 = vadd.f32 %v352_v39, %v263_v37  ;;  %v804_v41 = vpop.f32.mrb[3].mxu0 }
 0x171   : > { %v362_v43 = vmax.f32 %v353_v40, 0.0 }
 0x172   : > { %v357_v45 = vpop.f32.mrb[4].mxu0 }
 0x173   : > { %v358_v46 = vadd.f32 %v357_v45, %v268_v44  ;;  %v807_v47 = vpop.f32.mrb[5].mxu0  ;;  %v844_v48 = vpack.c.bf16 %v362_v43, %v361_v42 }
 0x175   : > { %845 = vmatpush3.bf16.msra.mxu1 %v844_v48  ;;  %v363_v49 = vmax.f32 %v358_v46, 0.0 }
 0x176   : > { %812 = vmatprep.subr.mxu1 %v884_v3 }
 0x179   : > { %813 = vmatpush3.msra.mxu1 %v363_v49 }
 0x17a   : > { %815 = vmatmul.mubr.msk.f32.vlgmr.msra.gmra.mrb[0].mxu1 %vm379_vm6, %v249_v29  ;;  %850 = vmatprep.subr.bf16.mxu1 %v882_v2  ;;  %v254_v2 = vld [vmem:[%s1046_s2 + $0x40] sm:$0xff] }
 0x17b   : > { %817 = vmatprep.mubr.msk.f32.mxu1 %vm883_vm0, %v884_v3 }
 0x17e   : > { %818 = vmatmul.mubr.msk.f32.gmra.mrb[2].mxu1 %vm379_vm6, %v250_v31 }
 0x17f   : > { %820 = vmatprep.mubr.msk.f32.mxu1 %vm883_vm0, %v884_v3 }
 0x182   : > { %821 = vmatmul.mubr.msk.f32.gmra.mrb[4].mxu1 %vm379_vm6, %v251_v32 }
 0x183   : > { %836 = vmatprep.mubr.msk.f32.mxu1 %vm883_vm0, %v884_v3  ;;  %v888_v3 = vmov 16  }
 0x184   : > { %870 = vset.pattern.permute.xlu1 %v888_v3  ;;  %871 = vset.pattern.permute.xlu0 %v888_v3 }
 0x185   : > { %562 = vperm.xlu1 %870, %v254_v2  }
 0x204   : > { %v563_v13 = vpop.permute.xlu1 %562 }
 0x24d   : > { %v452_v51 = vpop.f32.mrb[0].mxu1 }
 0x24e   : > { %v816_v52 = vpop.f32.mrb[1].mxu1  ;;  %v453_v54 = vadd.f32 %v452_v51, %v367_v50 }
 0x250   : > { %v466_v58 = vmax.f32 %v453_v54, 0.0 }
 0x251   : > { %v457_v55 = vpop.f32.mrb[2].mxu1 }
 0x252   : > { %v458_v56 = vadd.f32 %v457_v55, %v372_v53  ;;  %v819_v57 = vpop.f32.mrb[3].mxu1 }
 0x254   : > { %v467_v59 = vmax.f32 %v458_v56, 0.0 }
 0x255   : > { %v462_v61 = vpop.f32.mrb[4].mxu1 }
 0x256   : > { %v846_v62 = vpack.c.bf16 %v467_v59, %v466_v58  ;;  %v463_v63 = vadd.f32 %v462_v61, %v377_v60  ;;  %v822_v0 = vpop.f32.mrb[5].mxu1 }
 0x258   : > { %v468_v1 = vmax.f32 %v463_v63, 0.0  ;;  %847 = vmatprep.subr.bf16.mxu0 %v846_v62 }
 0x259   : > { %849 = vmatpush3.bf16.msra.mxu0 %v846_v62 }
 0x25a   : > { %827 = vmatprep.subr.mxu0 %v468_v1 }
 0x25d   : > { %828 = vmatpush3.msra.mxu0 %v468_v1 }
 0x25e   : > { %830 = vmatmul.mubr.msk.f32.vlgmr.msra.gmra.mrb[6].mxu0 %vm379_vm6, %v253_v33 }
 0x331   : > { %v831_v6 = vpop.f32.mrb[6].mxu0 }
 0x332   : > { %v555_v7 = vadd.f32 %v831_v6, %v477_v5  ;;  %v549_v8 = vpop.f32.mrb[7].mxu0 }
 0x333   : > { %v550_v9 = vadd.f32 %v549_v8, %v472_v4 }
 0x334   : > { %v559_v10 = vmax.f32 %v555_v7, 0.0 }
 0x335   : > { %v558_v11 = vmax.f32 %v550_v9, 0.0 }
 0x337   : > { %v851_v12 = vpack.c.bf16 %v559_v10, %v558_v11 }
 0x339   : > { %852 = vmatpush3.bf16.msra.mxu1 %v851_v12 }
 0x33c   : > { %837 = vmatmul.mubr.msk.f32.vlgmr.msra.gmra.mrb[6].mxu1 %vm565_vm7, %v254_v2 }
 0x40f   : > { %v634_v14 = vpop.f32.mrb[6].mxu1 }
 0x410   : > { %v635_v15 = vadd.f32 %v634_v14, %v563_v13  ;;  %v838_v16 = vpop.f32.mrb[7].mxu1 }
 0x412   : > { %872 = vtanh.f32 %v635_v15 }
 0x41c   : > { %v873_v17 = vpop.eup %872 }
 0x41d   : > { %639 = vxpose.xlu1.b32.start.end [1/1] (short) %v873_v17, 128 }
 0x49d   : > { %v655_v18 = vpop.trf.xlu1 }
 0x49e   : > { %672 = vst.msk [vmem:[%s1007_s18] sm:$0xff] %vm671_vm8, %v655_v18 }
 0x4a1   : > { %v656_v19 = vpop.trf.xlu1 }
 0x4a2   : > { %673 = vst.msk [vmem:[%s1007_s18 + $0x8] sm:$0xff] %vm671_vm8, %v656_v19 }
 0x4a5   : > { %v657_v20 = vpop.trf.xlu1 }
 0x4a6   : > { %674 = vst.msk [vmem:[%s1007_s18 + $0x10] sm:$0xff] %vm671_vm8, %v657_v20 }
 0x4a9   : > { %v658_v21 = vpop.trf.xlu1 }
 0x4aa   : > { %675 = vst.msk [vmem:[%s1007_s18 + $0x18] sm:$0xff] %vm671_vm8, %v658_v21 }
 0x4ad   : > { %v659_v22 = vpop.trf.xlu1 }
 0x4ae   : > { %676 = vst.msk [vmem:[%s1007_s18 + $0x20] sm:$0xff] %vm671_vm8, %v659_v22 }
 0x4b1   : > { %v660_v23 = vpop.trf.xlu1 }
 0x4b2   : > { %677 = vst.msk [vmem:[%s1007_s18 + $0x28] sm:$0xff] %vm671_vm8, %v660_v23 }
 0x4b5   : > { %v661_v24 = vpop.trf.xlu1 }
 0x4b6   : > { %678 = vst.msk [vmem:[%s1007_s18 + $0x30] sm:$0xff] %vm671_vm8, %v661_v24 }
 0x4b9   : > { %v662_v25 = vpop.trf.xlu1 }
 0x4ba   : > { %679 = vst.msk [vmem:[%s1007_s18 + $0x38] sm:$0xff] %vm671_vm8, %v662_v25 }
 0x4bd   : > { %v663_v26 = vpop.trf.xlu1 }
 0x4be   : > { %680 = vst.msk [vmem:[%s1007_s18 + $0x40] sm:$0xff] %vm671_vm8, %v663_v26 }
 0x4c1   : > { %v664_v27 = vpop.trf.xlu1 }
 0x4c2   : > { %681 = vst.msk [vmem:[%s1007_s18 + $0x48] sm:$0xff] %vm671_vm8, %v664_v27 }
 0x4c5   : > { %v665_v28 = vpop.trf.xlu1 }
 0x4c6   : > { %682 = vst.msk [vmem:[%s1007_s18 + $0x50] sm:$0xff] %vm671_vm8, %v665_v28 }
 0x4c9   : > { %v666_v29 = vpop.trf.xlu1 }
 0x4ca   : > { %683 = vst.msk [vmem:[%s1007_s18 + $0x58] sm:$0xff] %vm671_vm8, %v666_v29 }
 0x4cd   : > { %v667_v30 = vpop.trf.xlu1 }
 0x4ce   : > { %684 = vst.msk [vmem:[%s1007_s18 + $0x60] sm:$0xff] %vm671_vm8, %v667_v30 }
 0x4d1   : > { %v668_v31 = vpop.trf.xlu1 }
 0x4d2   : > { %685 = vst.msk [vmem:[%s1007_s18 + $0x68] sm:$0xff] %vm671_vm8, %v668_v31 }
 0x4d5   : > { %v669_v32 = vpop.trf.xlu1 }
 0x4d6   : > { %686 = vst.msk [vmem:[%s1007_s18 + $0x70] sm:$0xff] %vm671_vm8, %v669_v32 }
 0x4d9   : > { %v670_v33 = vpop.trf.xlu1 }
 0x4da   : > { %687 = vst.msk [vmem:[%s1007_s18 + $0x78] sm:$0xff] %vm671_vm8, %v670_v33 }
 0x4db PF: > { %s13_s12 = sadd.s32 1, %s880_s12  }
 0x4dc   : > { %p10_p5 = scmp.ge.s32.totalorder %s13_s12, 10  }
 0x4de   :  { %12 = sbr.rel (!%p10_p5) target bundleno = 1 (0x1), region = 65 }

</bundles_post_ra>
